<compile_context>
chip_gen: v7x
topology: tpu7x:2x2x1
jax: 0.10.0
libtpu: 0.0.40
codegen_flags: <defaults>
</compile_context>

<pallas_src>
import functools

import jax
import jax.numpy as jnp
from jax.experimental import pallas as pl
from jax.experimental.pallas import tpu as pltpu

GAMMA = 0.5
EPS = 1e-7

_LANE = 128
_MAX_ROW_TILE = 1024     # 1024 x 128 f32 = 512 KiB per input pipeline buffer


def _cdiv(a, b):
    return -(-a // b)


def _num_tensorcores():
    """2 on v7x (megacore sharding of the 'parallel' grid axis), else 1."""
    try:
        kind = jax.devices()[0].device_kind.lower()
    except Exception:  # pragma: no cover
        return 1
    return 2 if ("v7" in kind or "7x" in kind) else 1


def _focal_loss_kernel(yp_ref, yt_ref, out_ref, acc_ref, *,
                       row_tile, tiles_per_core, n_valid):
    c = pl.program_id(0)          # core / partial-sum index ("parallel")
    k = pl.program_id(1)          # reduction step ("arbitrary")

    @pl.when(k == 0)
    def _init():
        acc_ref[...] = jnp.zeros_like(acc_ref)

    x = yp_ref[...].astype(jnp.float32)
    yt = yt_ref[...].astype(jnp.float32)

    # Stable log-sigmoid identities (4 EUP ops total: exp, log, rsqrt, exp).
    neg_abs = -jnp.abs(x)
    t = jnp.exp(neg_abs)                       # exp(-|x|) in (0, 1]
    log1p_t = jnp.log(1.0 + t)
    log_s = jnp.minimum(x, 0.0) - log1p_t      # log(sigmoid(x))
    log_1ms = jnp.minimum(-x, 0.0) - log1p_t   # log(1 - sigmoid(x))
    r_big = jax.lax.rsqrt(1.0 + t)             # sqrt(sigmoid(|x|))
    r_small = jnp.exp(0.5 * neg_abs) * r_big   # sqrt(sigmoid(-|x|))
    pos = x >= 0.0
    sqrt_s = jnp.where(pos, r_big, r_small)    # sqrt(sigmoid(x))
    sqrt_1ms = jnp.where(pos, r_small, r_big)  # sqrt(1 - sigmoid(x))

    f = yt * log_s * sqrt_1ms + (1.0 - yt) * log_1ms * sqrt_s

    # TODO(synk): tile_start / n_valid are int32 -> overflows for tensors > 2^31 elements.
    tile_elems = row_tile * _LANE
    tile_start = (c * tiles_per_core + k) * tile_elems

    def _reduce(vals):
        # Sublane-group tree reduce: (row_tile, 128) -> (8, 128); pure VPU adds.
        return jnp.sum(vals.reshape(row_tile // 8, 8, _LANE), axis=0)

    # Full (entirely valid) tiles: no mask work at all.
    @pl.when(tile_start + tile_elems <= n_valid)
    def _full():
        acc_ref[...] += _reduce(f)

    # Tail / overshoot tiles: mask by global element index (true select, so NaN/Inf
    # from garbage rows in partial edge blocks never escapes).
    @pl.when(tile_start + tile_elems > n_valid)
    def _tail():
        rows_i = jax.lax.broadcasted_iota(jnp.int32, (row_tile, _LANE), 0)
        lanes_i = jax.lax.broadcasted_iota(jnp.int32, (row_tile, _LANE), 1)
        gidx = tile_start + rows_i * _LANE + lanes_i
        acc_ref[...] += _reduce(jnp.where(gidx < n_valid, f, 0.0))

    @pl.when(k == pl.num_programs(1) - 1)
    def _fin():
        out_ref[...] = acc_ref[...]


def focal_loss(y_pred, y_true):
    """Mean sigmoid focal loss (gamma=0.5, eps=1e-7); returns a scalar float32."""
    assert y_pred.shape == y_true.shape
    n_valid = int(y_pred.size)

    flat_p = y_pred.reshape(-1)
    flat_t = y_true.reshape(-1)

    # Only the tiny lane-tail pad (< 128 elements) when needed for the (rows, 128) reshape.
    pad_tail = (-n_valid) % _LANE
    if pad_tail:
        flat_p = jnp.pad(flat_p, (0, pad_tail))
        flat_t = jnp.pad(flat_t, (0, pad_tail))
    rows = (n_valid + pad_tail) // _LANE

    nc = _num_tensorcores()
    if rows < nc * 8:
        nc = 1
    rows_per_core = _cdiv(rows, nc)
    row_tile = min(_MAX_ROW_TILE, _cdiv(rows_per_core, 8) * 8)  # multiple of 8
    tiles_total = _cdiv(rows, row_tile)
    tiles_per_core = _cdiv(tiles_total, nc)
    grid = (nc, tiles_per_core)

    p2 = flat_p.reshape(rows, _LANE)
    t2 = flat_t.reshape(rows, _LANE)

    # Clamp the block index so overshoot grid steps stay in-bounds; their contribution is
    # zeroed in-kernel by the global-index mask.
    in_spec = pl.BlockSpec(
        (row_tile, _LANE),
        lambda c, k: (jnp.minimum(c * tiles_per_core + k, tiles_total - 1), 0))

    partials = pl.pallas_call(
        functools.partial(_focal_loss_kernel,
                          row_tile=row_tile,
                          tiles_per_core=tiles_per_core,
                          n_valid=n_valid),
        out_shape=jax.ShapeDtypeStruct((nc * 8, _LANE), jnp.float32),
        grid=grid,
        in_specs=[in_spec, in_spec],
        out_specs=pl.BlockSpec((8, _LANE), lambda c, k: (c, 0)),
        scratch_shapes=[pltpu.VMEM((8, _LANE), jnp.float32)],
        compiler_params=pltpu.CompilerParams(
            dimension_semantics=("parallel", "arbitrary")),
    )(p2, t2)

    # Final scalar reduction of the lane-dense partials (tiny) done in XLA.
    return -jnp.sum(partials) / jnp.float32(n_valid)


def _focal_loss_ref(y_pred, y_true):
    """Faithful port of the PyTorch module (for correctness checking)."""
    s = jax.nn.sigmoid(y_pred.astype(jnp.float32))
    yt = y_true.astype(jnp.float32)
    f1 = yt * jnp.log(s + EPS) * jnp.power(1.0 - s + EPS, GAMMA)
    f2 = (1.0 - yt) * jnp.log(1.0 - s + EPS) * jnp.power(s + EPS, GAMMA)
    return -(f1 + f2).mean()


if __name__ == "__main__":
    key = jax.random.PRNGKey(0)
    k1, k2 = jax.random.split(key)
    # NCHW logits and binary targets, small shapes.
    y_pred = jax.random.normal(k1, (2, 4, 16, 16), dtype=jnp.float32)
    y_true = (jax.random.uniform(k2, (2, 4, 16, 16)) > 0.5).astype(jnp.float32)

    out = jax.block_until_ready(focal_loss(y_pred, y_true))
    ref = jax.block_until_ready(_focal_loss_ref(y_pred, y_true))
    assert jnp.allclose(out, ref, rtol=5e-5, atol=1e-5), (out, ref)
    print("KERNEL_OK")
</pallas_src>

<mosaic_0001>
module attributes {stable_mosaic.version = 11 : i64} {
  func.func @_focal_loss_kernel(%arg0: i32, %arg1: i32, %arg2: memref<16x128xf32, #tpu.memory_space<vmem>>, %arg3: memref<16x128xf32, #tpu.memory_space<vmem>>, %arg4: memref<8x128xf32, #tpu.memory_space<vmem>>, %arg5: memref<8x128xf32, #tpu.memory_space<vmem>>) attributes {dimension_semantics = [#tpu.dimension_semantics<parallel>, #tpu.dimension_semantics<arbitrary>], iteration_bounds = array<i64: 1, 1>, scalar_prefetch = 0 : i64, scratch_operands = 1 : i64, tpu.core_type = #tpu.core_type<tc>, window_params = [{transform_indices = @transform_0, window_bounds = array<i64: 16, 128>}, {transform_indices = @transform_1, window_bounds = array<i64: 16, 128>}, {transform_indices = @transform_2, window_bounds = array<i64: 8, 128>}]} {
    %c0_i32 = arith.constant 0 : i32
    %0 = arith.cmpi eq, %arg1, %c0_i32 : i32
    %1 = arith.extui %0 : i1 to i32
    %c0_i32_0 = arith.constant 0 : i32
    %2 = arith.cmpi ne, %1, %c0_i32_0 : i32
    scf.if %2 {
      %cst_20 = arith.constant 0.000000e+00 : f32
      %52 = vector.broadcast %cst_20 : f32 to vector<8x128xf32>
      %c0_21 = arith.constant 0 : index
      %c0_22 = arith.constant 0 : index
      %53 = vector.load %arg5[%c0_21, %c0_22] : memref<8x128xf32, #tpu.memory_space<vmem>>, vector<8x128xf32>
      tpu.vector_store %arg5[%c0_21, %c0_22], %52 {strides = array<i32>} : memref<8x128xf32, #tpu.memory_space<vmem>>, vector<8x128xf32>,
    } else {
    }
    %c0 = arith.constant 0 : index
    %c0_1 = arith.constant 0 : index
    %3 = vector.load %arg2[%c0, %c0_1] : memref<16x128xf32, #tpu.memory_space<vmem>>, vector<16x128xf32>
    %c0_2 = arith.constant 0 : index
    %c0_3 = arith.constant 0 : index
    %4 = vector.load %arg3[%c0_2, %c0_3] : memref<16x128xf32, #tpu.memory_space<vmem>>, vector<16x128xf32>
    %5 = math.absf %3 : vector<16x128xf32>
    %cst = arith.constant 0.000000e+00 : f32
    %6 = vector.broadcast %cst : f32 to vector<16x128xf32>
    %7 = arith.subf %6, %5 : vector<16x128xf32>
    %8 = math.exp %7 : vector<16x128xf32>
    %cst_4 = arith.constant 1.000000e+00 : f32
    %9 = vector.broadcast %cst_4 : f32 to vector<16x128xf32>
    %10 = arith.addf %9, %8 : vector<16x128xf32>
    %11 = math.log %10 : vector<16x128xf32>
    %cst_5 = arith.constant 0.000000e+00 : f32
    %12 = vector.broadcast %cst_5 : f32 to vector<16x128xf32>
    %13 = arith.minimumf %3, %12 : vector<16x128xf32>
    %14 = arith.subf %13, %11 : vector<16x128xf32>
    %cst_6 = arith.constant 0.000000e+00 : f32
    %15 = vector.broadcast %cst_6 : f32 to vector<16x128xf32>
    %16 = arith.subf %15, %3 : vector<16x128xf32>
    %cst_7 = arith.constant 0.000000e+00 : f32
    %17 = vector.broadcast %cst_7 : f32 to vector<16x128xf32>
    %18 = arith.minimumf %16, %17 : vector<16x128xf32>
    %19 = arith.subf %18, %11 : vector<16x128xf32>
    %cst_8 = arith.constant 1.000000e+00 : f32
    %20 = vector.broadcast %cst_8 : f32 to vector<16x128xf32>
    %21 = arith.addf %20, %8 : vector<16x128xf32>
    %22 = math.rsqrt %21 : vector<16x128xf32>
    %cst_9 = arith.constant 5.000000e-01 : f32
    %23 = vector.broadcast %cst_9 : f32 to vector<16x128xf32>
    %24 = arith.mulf %23, %7 : vector<16x128xf32>
    %25 = math.exp %24 : vector<16x128xf32>
    %26 = arith.mulf %25, %22 : vector<16x128xf32>
    %cst_10 = arith.constant 0.000000e+00 : f32
    %27 = vector.broadcast %cst_10 : f32 to vector<16x128xf32>
    %28 = arith.cmpf oge, %3, %27 : vector<16x128xf32>
    %29 = arith.select %28, %22, %26 : vector<16x128xi1>, vector<16x128xf32>
    %30 = arith.select %28, %26, %22 : vector<16x128xi1>, vector<16x128xf32>
    %31 = arith.mulf %4, %14 : vector<16x128xf32>
    %32 = arith.mulf %31, %30 : vector<16x128xf32>
    %cst_11 = arith.constant 1.000000e+00 : f32
    %33 = vector.broadcast %cst_11 : f32 to vector<16x128xf32>
    %34 = arith.subf %33, %4 : vector<16x128xf32>
    %35 = arith.mulf %34, %19 : vector<16x128xf32>
    %36 = arith.mulf %35, %29 : vector<16x128xf32>
    %37 = arith.addf %32, %36 : vector<16x128xf32>
    %c1_i32 = arith.constant 1 : i32
    %38 = arith.muli %arg0, %c1_i32 : i32
    %39 = arith.addi %38, %arg1 : i32
    %c2048_i32 = arith.constant 2048 : i32
    %40 = arith.muli %39, %c2048_i32 : i32
    %c2048_i32_12 = arith.constant 2048 : i32
    %41 = arith.addi %40, %c2048_i32_12 : i32
    %c2048_i32_13 = arith.constant 2048 : i32
    %42 = arith.cmpi sle, %41, %c2048_i32_13 : i32
    %43 = arith.extui %42 : i1 to i32
    %c0_i32_14 = arith.constant 0 : i32
    %44 = arith.cmpi ne, %43, %c0_i32_14 : i32
    scf.if %44 {
      %c0_20 = arith.constant 0 : index
      %c0_21 = arith.constant 0 : index
      %52 = vector.load %arg5[%c0_20, %c0_21] : memref<8x128xf32, #tpu.memory_space<vmem>>, vector<8x128xf32>
      %53 = vector.shape_cast %37 : vector<16x128xf32> to vector<2x8x128xf32>
      %cst_22 = arith.constant dense<0.000000e+00> : vector<8x128xf32>
      %54 = vector.multi_reduction <add>, %53, %cst_22 [0] : vector<2x8x128xf32> to vector<8x128xf32>
      %55 = arith.addf %52, %54 : vector<8x128xf32>
      %c0_23 = arith.constant 0 : index
      %c0_24 = arith.constant 0 : index
      %56 = vector.load %arg5[%c0_23, %c0_24] : memref<8x128xf32, #tpu.memory_space<vmem>>, vector<8x128xf32>
      tpu.vector_store %arg5[%c0_23, %c0_24], %55 {strides = array<i32>} : memref<8x128xf32, #tpu.memory_space<vmem>>, vector<8x128xf32>,
    } else {
    }
    %c2048_i32_15 = arith.constant 2048 : i32
    %45 = arith.addi %40, %c2048_i32_15 : i32
    %c2048_i32_16 = arith.constant 2048 : i32
    %46 = arith.cmpi sgt, %45, %c2048_i32_16 : i32
    %47 = arith.extui %46 : i1 to i32
    %c0_i32_17 = arith.constant 0 : i32
    %48 = arith.cmpi ne, %47, %c0_i32_17 : i32
    scf.if %48 {
      %52 = tpu.iota {dimensions = array<i32: 0>} : vector<16x128xi32>
      %53 = tpu.iota {dimensions = array<i32: 1>} : vector<16x128xi32>
      %c128_i32 = arith.constant 128 : i32
      %54 = vector.broadcast %c128_i32 : i32 to vector<16x128xi32>
      %55 = arith.muli %52, %54 : vector<16x128xi32>
      %56 = vector.broadcast %40 : i32 to vector<16x128xi32>
      %57 = arith.addi %56, %55 : vector<16x128xi32>
      %58 = arith.addi %57, %53 : vector<16x128xi32>
      %c0_20 = arith.constant 0 : index
      %c0_21 = arith.constant 0 : index
      %59 = vector.load %arg5[%c0_20, %c0_21] : memref<8x128xf32, #tpu.memory_space<vmem>>, vector<8x128xf32>
      %c2048_i32_22 = arith.constant 2048 : i32
      %60 = vector.broadcast %c2048_i32_22 : i32 to vector<16x128xi32>
      %61 = arith.cmpi slt, %58, %60 : vector<16x128xi32>
      %cst_23 = arith.constant 0.000000e+00 : f32
      %62 = vector.broadcast %cst_23 : f32 to vector<16x128xf32>
      %63 = arith.select %61, %37, %62 : vector<16x128xi1>, vector<16x128xf32>
      %64 = vector.shape_cast %63 : vector<16x128xf32> to vector<2x8x128xf32>
      %cst_24 = arith.constant dense<0.000000e+00> : vector<8x128xf32>
      %65 = vector.multi_reduction <add>, %64, %cst_24 [0] : vector<2x8x128xf32> to vector<8x128xf32>
      %66 = arith.addf %59, %65 : vector<8x128xf32>
      %c0_25 = arith.constant 0 : index
      %c0_26 = arith.constant 0 : index
      %67 = vector.load %arg5[%c0_25, %c0_26] : memref<8x128xf32, #tpu.memory_space<vmem>>, vector<8x128xf32>
      tpu.vector_store %arg5[%c0_25, %c0_26], %66 {strides = array<i32>} : memref<8x128xf32, #tpu.memory_space<vmem>>, vector<8x128xf32>,
    } else {
    }
    %c0_i32_18 = arith.constant 0 : i32
    %49 = arith.cmpi eq, %arg1, %c0_i32_18 : i32
    %50 = arith.extui %49 : i1 to i32
    %c0_i32_19 = arith.constant 0 : i32
    %51 = arith.cmpi ne, %50, %c0_i32_19 : i32
    scf.if %51 {
      %c0_20 = arith.constant 0 : index
      %c0_21 = arith.constant 0 : index
      %52 = vector.load %arg5[%c0_20, %c0_21] : memref<8x128xf32, #tpu.memory_space<vmem>>, vector<8x128xf32>
      %c0_22 = arith.constant 0 : index
      %c0_23 = arith.constant 0 : index
      %53 = vector.load %arg4[%c0_22, %c0_23] : memref<8x128xf32, #tpu.memory_space<vmem>>, vector<8x128xf32>
      tpu.vector_store %arg4[%c0_22, %c0_23], %52 {strides = array<i32>} : memref<8x128xf32, #tpu.memory_space<vmem>>, vector<8x128xf32>,
    } else {
    }
    return
  }
  func.func @transform_0(%arg0: i32, %arg1: i32) -> (i32, i32) {
    %c1_i32 = arith.constant 1 : i32
    %0 = arith.muli %arg0, %c1_i32 : i32
    %1 = arith.addi %0, %arg1 : i32
    %c0_i32 = arith.constant 0 : i32
    %2 = arith.minsi %1, %c0_i32 : i32
    %c0_i32_0 = arith.constant 0 : i32
    %c0_i32_1 = arith.constant 0 : i32
    return %2, %c0_i32_0 : i32, i32
  }
  func.func @transform_1(%arg0: i32, %arg1: i32) -> (i32, i32) {
    %c1_i32 = arith.constant 1 : i32
    %0 = arith.muli %arg0, %c1_i32 : i32
    %1 = arith.addi %0, %arg1 : i32
    %c0_i32 = arith.constant 0 : i32
    %2 = arith.minsi %1, %c0_i32 : i32
    %c0_i32_0 = arith.constant 0 : i32
    %c0_i32_1 = arith.constant 0 : i32
    return %2, %c0_i32_0 : i32, i32
  }
  func.func @transform_2(%arg0: i32, %arg1: i32) -> (i32, i32) {
    %c0_i32 = arith.constant 0 : i32
    %c0_i32_0 = arith.constant 0 : i32
    return %arg0, %c0_i32 : i32, i32
  }
}

</mosaic_0001>

<bundles_post_ra>
// kernel: tpu_custom_call.1
= control target key start
LH: loop header
LB: loop body
LE: loop exit
PB: predicated region body
PF: predicated region fallthrough
CT: control target
= control target key end

     0   :  { %7 = vsyncpa [#allocation4], 0  ;;  %s330_s0 = inlined_call_operand.hbm [shape: f32[16,128], index: 0, kind: input, shape index: {}]   ;;  %s331_s1 = inlined_call_operand.hbm [shape: f32[16,128], index: 1, kind: input, shape index: {}]   ;;  %s332_s2 = inlined_call_operand.hbm [shape: f32[8,128], index: 2, kind: output, shape index: {}]  }
   0x1   :  { %8 = vsyncpa [#allocation7], 0 }
   0x2   :  { %9 = vsyncpa [#allocation5], 0  ;;  %s274_s9 = smov [#allocation3]   ;;  %s202_s13 = scalar_lea.hbm %s330_s0, 256 }
   0x3   :  { %s21_s10 = sshll.u32 %s274_s9, 4  ;;  %p203_p0 = scmp.ne.s32.totalorder %s330_s0, %s202_s13  ;;  %s22_s10 = int_to_ptr.vmem [resolvable:$true] %s21_s10 }
   0x4   :  { %p206_p1 = scmp.lt.u32.totalorder %s202_s13, %s330_s0 }
   0x6   :  { %p208_p2 = pnand %p206_p1, %p203_p0 }
   0x8   :  { %211 = shalt.err (!%p208_p2)
}
   0x9   :  { %s212_s18 = scalar_lea.vmem %s22_s10, 256  ;;  %p217_p4 = scmp.lt.s32.totalorder %s22_s10, %s22_s10 }
   0xa   :  { %p213_p3 = scmp.ne.s32.totalorder %s22_s10, %s212_s18  ;;  %p218_p5 = scmp.lt.s32.totalorder %s212_s18, %s212_s18 }
   0xc   :  { %p219_p6 = por %p218_p5, %p217_p4 }
   0xe   :  { %p220_p7 = pnand %p219_p6, %p213_p3 }
  0x10   :  { %223 = shalt.err (!%p220_p7)
}
  0x11   :  { %s275_s19 = smov 128   ;;  %s276_s20 = smov 8  }
  0x12   :  { %27 = dma.hbm_to_vmem [thread:$0]  %s330_s0, 256, %s22_s10, [#allocation4], %s275_s19, %s275_s19, %s276_s20  }
  0x13   :  { %s277_s23 = smov [#allocation6]   ;;  %s224_s27 = scalar_lea.hbm %s331_s1, 256 }
  0x14   :  { %s39_s24 = sshll.u32 %s277_s23, 4  ;;  %p225_p8 = scmp.ne.s32.totalorder %s331_s1, %s224_s27  ;;  %s40_s24 = int_to_ptr.vmem [resolvable:$true] %s39_s24 }
  0x15   :  { %p228_p9 = scmp.lt.u32.totalorder %s224_s27, %s331_s1 }
  0x17   :  { %p230_p10 = pnand %p228_p9, %p225_p8 }
  0x19   :  { %233 = shalt.err (!%p230_p10)
}
  0x1a   :  { %s234_s4 = scalar_lea.vmem %s40_s24, 256  ;;  %p239_p12 = scmp.lt.s32.totalorder %s40_s24, %s40_s24 }
  0x1b   :  { %p235_p11 = scmp.ne.s32.totalorder %s40_s24, %s234_s4  ;;  %p240_p13 = scmp.lt.s32.totalorder %s234_s4, %s234_s4 }
  0x1d   :  { %p241_p0 = por %p240_p13, %p239_p12 }
  0x1f   :  { %p242_p1 = pnand %p241_p0, %p235_p11 }
  0x21   :  { %245 = shalt.err (!%p242_p1)
}
  0x22   :  { %45 = dma.hbm_to_vmem [thread:$0]  %s331_s1, 256, %s40_s24, [#allocation7], %s275_s19, %s275_s19, %s276_s20  }
  0x23   :  { %268 = dma.done.wait [#allocation4], 256  }
  0x24   :  { %269 = vsyncadd [#allocation4], 4294967040 }
  0x25   :  { %270 = dma.done.wait [#allocation7], 256  }
  0x26   :  { %271 = vsyncadd [#allocation7], 4294967040  ;;  %v65_v0 = vld [vmem:[#allocation3] sm:$0xff]  ;;  %v66_v1 = vld [vmem:[#allocation3 + $0x8] sm:$0xff]  ;;  %s278_s1 = smov [#allocation8]  }
  0x27   :  { %v69_v2 = vand.u32 2147483647, %v65_v0  ;;  %v70_v3 = vand.u32 2147483647, %v66_v1  ;;  %v87_v16 = vsub.f32 0.0, %v65_v0  ;;  %v88_v17 = vsub.f32 0.0, %v66_v1 }
  0x28   :  { %v67_v19 = vld [vmem:[#allocation6] sm:$0xff]  ;;  %v68_v21 = vld [vmem:[#allocation6 + $0x8] sm:$0xff]  ;;  %v83_v22 = vmin.f32 %v65_v0, 0.0  ;;  %v84_v25 = vmin.f32 %v66_v1, 0.0  ;;  %vm103_vm0 = vcmp.ge.f32.partialorder %v65_v0, 0.0  ;;  %vm104_vm1 = vcmp.ge.f32.partialorder %v66_v1, 0.0 }
  0x29   :  { %v71_v4 = vsub.f32 0.0, %v69_v2  ;;  %v72_v5 = vsub.f32 0.0, %v70_v3  ;;  %v89_v23 = vmin.f32 %v87_v16, 0.0  ;;  %v90_v26 = vmin.f32 %v88_v17, 0.0  ;;  %s167_s6 = sshll.u32 %s278_s1, 4  ;;  %s168_s6 = int_to_ptr.vmem [resolvable:$true] %s167_s6 }
  0x2a   :  { %v113_v29 = vsub.f32 1.0, %v67_v19  ;;  %v114_v32 = vsub.f32 1.0, %v68_v21  ;;  %s246_s7 = scalar_lea.vmem %s168_s6, 128  ;;  %p251_p3 = scmp.lt.s32.totalorder %s168_s6, %s168_s6 }
  0x2b   :  { %v73_v6 = vmul.f32 1.442695, %v71_v4  ;;  %v75_v7 = vmul.f32 1.442695, %v72_v5  ;;  %v95_v8 = vmul.f32 0.5, %v71_v4  ;;  %v96_v9 = vmul.f32 0.5, %v72_v5  ;;  %p247_p2 = scmp.ne.s32.totalorder %s168_s6, %s246_s7  ;;  %p252_p4 = scmp.lt.s32.totalorder %s246_s7, %s246_s7 }
  0x2d   :  { %186 = vpow2.f32 %v73_v6  ;;  %v97_v10 = vmul.f32 1.442695, %v95_v8  ;;  %v99_v11 = vmul.f32 1.442695, %v96_v9  ;;  %p253_p5 = por %p252_p4, %p251_p3 }
  0x2e   :  { %188 = vpow2.f32 %v75_v7 }
  0x2f   :  { %190 = vpow2.f32 %v97_v10  ;;  %p254_p6 = pnand %p253_p5, %p247_p2 }
  0x30   :  { %192 = vpow2.f32 %v99_v11 }
  0x37   :  { %v187_v12 = vpop.eup %186 }
  0x38   :  { %v189_v13 = vpop.eup %188  ;;  %v77_v14 = vadd.f32 1.0, %v187_v12 }
  0x39   :  { %v78_v15 = vadd.f32 1.0, %v189_v13  ;;  %v191_v18 = vpop.eup %190 }
  0x3a   :  { %194 = vlog2.f32 %v77_v14  ;;  %v193_v20 = vpop.eup %192 }
  0x3b   :  { %196 = vlog2.f32 %v78_v15 }
  0x3c   :  { %198 = vrsqrt.f32 %v77_v14 }
  0x3d   :  { %200 = vrsqrt.f32 %v78_v15 }
  0x44   :  { %v195_v24 = vpop.eup %194 }
  0x45   :  { %v197_v27 = vpop.eup %196  ;;  %v80_v28 = vmul.f32 0.6931472, %v195_v24 }
  0x46   :  { %v199_v30 = vpop.eup %198  ;;  %v82_v31 = vmul.f32 0.6931472, %v197_v27 }
  0x47   :  { %v201_v33 = vpop.eup %200  ;;  %v85_v34 = vsub.f32 %v83_v22, %v80_v28  ;;  %v91_v35 = vsub.f32 %v89_v23, %v80_v28  ;;  %v101_v36 = vmul.f32 %v199_v30, %v191_v18 }
  0x48   :  { %v86_v37 = vsub.f32 %v84_v25, %v82_v31  ;;  %v92_v38 = vsub.f32 %v90_v26, %v82_v31  ;;  %v102_v39 = vmul.f32 %v201_v33, %v193_v20 }
  0x49   :  { %v105_v40 = vsel %vm103_vm0, %v199_v30, %v101_v36  ;;  %v107_v41 = vsel %vm103_vm0, %v101_v36, %v199_v30  ;;  %v109_v42 = vmul.f32 %v85_v34, %v67_v19  ;;  %v115_v43 = vmul.f32 %v113_v29, %v91_v35 }
  0x4a   :  { %v106_v44 = vsel %vm104_vm1, %v201_v33, %v102_v39  ;;  %v108_v45 = vsel %vm104_vm1, %v102_v39, %v201_v33  ;;  %v110_v46 = vmul.f32 %v86_v37, %v68_v21  ;;  %v116_v47 = vmul.f32 %v114_v32, %v92_v38 }
  0x4b   :  { %v111_v48 = vmul.f32 %v109_v42, %v107_v41  ;;  %v117_v49 = vmul.f32 %v115_v43, %v105_v40 }
  0x4c   :  { %v112_v50 = vmul.f32 %v110_v46, %v108_v45  ;;  %v118_v51 = vmul.f32 %v116_v47, %v106_v44 }
  0x4d   :  { %v119_v52 = vadd.f32 %v117_v49, %v111_v48 }
  0x4e   :  { %v120_v53 = vadd.f32 %v118_v51, %v112_v50 }
  0x50   :  { %v129_v54 = vadd.f32 %v120_v53, %v119_v52 }
  0x52   :  { %160 = vst [vmem:[#allocation8] sm:$0xff] %v129_v54 }
  0x53   :  { %257 = shalt.err (!%p254_p6)
}
  0x54   :  { %s258_s10 = scalar_lea.hbm %s332_s2, 128 }
  0x55   :  { %p259_p7 = scmp.ne.s32.totalorder %s332_s2, %s258_s10  ;;  %p262_p8 = scmp.lt.u32.totalorder %s258_s10, %s332_s2 }
  0x57   :  { %p264_p9 = pnand %p262_p8, %p259_p7 }
  0x59   :  { %267 = shalt.err (!%p264_p9)
}
  0x5a   :  { %170 = dma.vmem_to_hbm [thread:$0]  %s168_s6, 128, %s332_s2, [#allocation5]  }
  0x5b   :  { %272 = dma.done.wait [#allocation5], 128  }
  0x5c   :  { %273 = vsyncadd [#allocation5], 4294967168 }
  0x5d   :  { %174 = vsyncpa [#allocation4], 1 }
  0x5e   :  { %175 = vsyncpa [#allocation7], 1 }
  0x5f   :  { %176 = vsyncpa [#allocation5], 1 }

</bundles_post_ra>
